<compile_context>
chip_gen: v7x
topology: tpu7x:2x2x1
jax: 0.10.0
libtpu: 0.0.40
codegen_flags: <defaults>
</compile_context>

<pallas_src>
import functools

import jax
import jax.numpy as jnp
import numpy as np
from jax.experimental import pallas as pl
from jax.experimental.pallas import tpu as pltpu


def _attention_kernel(x_ref, wq_ref, wk_ref, wv_ref, wo_ref, b_ref,
                      out_ref, attn_ref, *, heads, dim_head, bt, n):
    """One batch tile (bt elements): per-head attention + fused out projection."""
    d = x_ref.shape[-1]
    # bf16 MXU operands, cast in-kernel (input stays f32 in HBM).
    x = x_ref[...].astype(jnp.bfloat16)                          # (bt*n, D)

    acc = jnp.zeros((bt * n, d), jnp.float32)                    # out-proj accumulator
    for h in range(heads):                                       # static unroll
        # Leading-axis weight indexing: no lane-dimension slicing / relayouts.
        wq = wq_ref[h]                                           # (D, dh) bf16, scale folded
        wk = wk_ref[h]                                           # (D, dh) bf16
        wv = wv_ref[h]                                           # (D, dh) bf16
        wo = wo_ref[h]                                           # (dh, D) bf16

        q = jnp.dot(x, wq, preferred_element_type=jnp.float32)   # (bt*n, dh) f32
        k = jnp.dot(x, wk, preferred_element_type=jnp.float32)
        v = jnp.dot(x, wv, preferred_element_type=jnp.float32)

        # Leading-axis split only (no lane movement): per-batch attention.
        qb = q.reshape(bt, n, dim_head).astype(jnp.bfloat16)
        kb = k.reshape(bt, n, dim_head).astype(jnp.bfloat16)
        vb = v.reshape(bt, n, dim_head).astype(jnp.bfloat16)

        # Batched q @ k^T over the batch tile (bf16 MXU inputs, f32 accumulate).
        dots = jnp.einsum('bqd,bkd->bqk', qb, kb,
                          preferred_element_type=jnp.float32)    # (bt, n, n)

        # Softmax in f32. Exact reciprocal so the stored attention rows sum to 1.
        dots = dots - jnp.max(dots, axis=-1, keepdims=True)
        e = jnp.exp(dots)
        inv = pl.reciprocal(jnp.sum(e, axis=-1, keepdims=True))
        attn = e * inv                                           # (bt, n, n) f32
        if attn_ref is not None:
            attn_ref[:, h, :, :] = attn

        # attn @ V (bf16 inputs) and accumulated output projection: only one
        # (bt*n, D) value stays live across the head loop.
        pv = jnp.einsum('bqk,bkd->bqd', attn.astype(jnp.bfloat16), vb,
                        preferred_element_type=jnp.float32)      # (bt, n, dh)
        acc = acc + jnp.dot(pv.reshape(bt * n, dim_head).astype(jnp.bfloat16),
                            wo, preferred_element_type=jnp.float32)

    out_ref[...] = acc + b_ref[...]                              # (bt*n, D) f32


def attention_forward(x, w_qkv, w_out, b_out, heads, *,
                      return_attention=True, batch_tile=None):
    """Pallas forward matching Attention.forward (eval mode, no mask).

    x:     (B, N, D) float32
    w_qkv: (3*inner, D)   -- PyTorch nn.Linear weight (out_features, in_features)
    w_out: (D, inner)
    b_out: (D,)
    Returns (out (B, N, D), attention (B, H, N, N)) or just out if
    return_attention=False.
    """
    B, N, D = x.shape
    inner = w_qkv.shape[0] // 3
    dh = inner // heads
    scale = dh ** (-0.5)

    # Per-head leading-axis weight packing; fold the 1/sqrt(dh) scale into the
    # Q weights once (host side); bf16 MXU dtype.
    wq = (w_qkv[:inner].reshape(heads, dh, D).transpose(0, 2, 1)
          * scale).astype(jnp.bfloat16)                          # (H, D, dh)
    wk = w_qkv[inner:2 * inner].reshape(heads, dh, D).transpose(0, 2, 1) \
        .astype(jnp.bfloat16)                                    # (H, D, dh)
    wv = w_qkv[2 * inner:].reshape(heads, dh, D).transpose(0, 2, 1) \
        .astype(jnp.bfloat16)                                    # (H, D, dh)
    wo = w_out.T.reshape(heads, dh, D).astype(jnp.bfloat16)      # (H, dh, D)
    b2 = b_out.reshape(1, D).astype(jnp.float32)

    # Batch-tile selection: biggest divisor of B whose double-buffered
    # x/out/attn footprint fits a conservative VMEM budget.
    if batch_tile is None:
        per_b = 4 * (2 * N * D + heads * N * N) * 2
        budget = 8 << 20
        batch_tile = 1
        for cand in range(1, B + 1):
            if B % cand == 0 and cand * per_b <= budget:
                batch_tile = cand
    bt = batch_tile
    assert B % bt == 0, "batch_tile must divide B"

    # Flatten (B, N, D) -> (B*N, D) in the wrapper so the kernel needs no
    # reshape at load/store time and the projections see (bt*N, D) row blocks.
    x2 = x.reshape(B * N, D).astype(jnp.float32)

    kern = functools.partial(_attention_kernel, heads=heads, dim_head=dh,
                             bt=bt, n=N)
    if return_attention:
        kernel = kern
        out_shape = (jax.ShapeDtypeStruct((B * N, D), jnp.float32),
                     jax.ShapeDtypeStruct((B, heads, N, N), jnp.float32))
        out_specs = (pl.BlockSpec((bt * N, D), lambda i: (i, 0)),
                     pl.BlockSpec((bt, heads, N, N), lambda i: (i, 0, 0, 0)))
    else:
        def kernel(x_ref, wq_ref, wk_ref, wv_ref, wo_ref, b_ref, out_ref):
            kern(x_ref, wq_ref, wk_ref, wv_ref, wo_ref, b_ref, out_ref, None)
        out_shape = jax.ShapeDtypeStruct((B * N, D), jnp.float32)
        out_specs = pl.BlockSpec((bt * N, D), lambda i: (i, 0))

    # Advisory cost estimate for XLA scheduling around the custom call.
    w_bytes = (wq.size + wk.size + wv.size + wo.size) * 2 + D * 4
    flops = (2 * B * N * D * 3 * inner          # QKV projections
             + 4 * B * heads * N * N * dh       # scores + attn@V
             + 2 * B * N * inner * D)           # output projection
    bytes_accessed = (B * N * D * 4 * 2 + w_bytes
                      + (B * heads * N * N * 4 if return_attention else 0))
    cost = pl.CostEstimate(flops=flops, transcendentals=B * heads * N * N,
                           bytes_accessed=bytes_accessed)

    # Explicit scoped-VMEM budget: double-buffered blocks + weights + headroom.
    vmem = 2 * (2 * bt * N * D * 4 + bt * heads * N * N * 4 + w_bytes) + (8 << 20)
    vmem = int(min(vmem, 64 << 20))              # stay within v7x physical VMEM

    results = pl.pallas_call(
        kernel,
        out_shape=out_shape,
        grid=(B // bt,),
        in_specs=[
            pl.BlockSpec((bt * N, D), lambda i: (i, 0)),
            pl.BlockSpec((heads, D, dh), lambda i: (0, 0, 0)),
            pl.BlockSpec((heads, D, dh), lambda i: (0, 0, 0)),
            pl.BlockSpec((heads, D, dh), lambda i: (0, 0, 0)),
            pl.BlockSpec((heads, dh, D), lambda i: (0, 0, 0)),
            pl.BlockSpec((1, D), lambda i: (0, 0)),
        ],
        out_specs=out_specs,
        compiler_params=pltpu.CompilerParams(
            dimension_semantics=("parallel",),
            vmem_limit_bytes=vmem),
        cost_estimate=cost,
    )(x2, wq, wk, wv, wo, b2)

    if return_attention:
        out_flat, attention = results
        return out_flat.reshape(B, N, D), attention
    return results.reshape(B, N, D)


def _reference_forward(x, w_qkv, w_out, b_out, heads):
    """Pure-JAX reference mirroring the PyTorch forward."""
    B, N, D = x.shape
    inner = w_qkv.shape[0] // 3
    dh = inner // heads
    qkv = x @ w_qkv.T
    q, k, v = jnp.split(qkv, 3, axis=-1)

    def rh(t):
        return t.reshape(B, N, heads, dh).transpose(0, 2, 1, 3)

    q, k, v = rh(q), rh(k), rh(v)
    dots = jnp.einsum('bhnd,bhmd->bhnm', q, k) * (dh ** -0.5)
    attn = jax.nn.softmax(dots, axis=-1)
    o = jnp.einsum('bhnm,bhmd->bhnd', attn, v)
    o = o.transpose(0, 2, 1, 3).reshape(B, N, inner)
    return o @ w_out.T + b_out, attn


if __name__ == "__main__":
    # Small shapes consistent with the module's forward.
    B, N, D = 2, 8, 32
    heads, dim_head = 4, 8
    inner = heads * dim_head

    key = jax.random.PRNGKey(0)
    kx, kqkv, kw, kb = jax.random.split(key, 4)

    x = jax.random.normal(kx, (B, N, D), dtype=jnp.float32)
    # nn.Linear(dim, inner*3, bias=False).weight : (3*inner, dim)
    w_qkv = jax.random.normal(kqkv, (3 * inner, D), dtype=jnp.float32) * 0.05
    # nn.Linear(inner, dim).weight : (dim, inner), bias : (dim,)
    w_out = jax.random.normal(kw, (D, inner), dtype=jnp.float32) * 0.05
    b_out = jax.random.normal(kb, (D,), dtype=jnp.float32) * 0.05

    out, attention = attention_forward(x, w_qkv, w_out, b_out, heads)
    out = jax.block_until_ready(out)
    attention = jax.block_until_ready(attention)

    # Attention-dropped path (no (B, H, N, N) HBM writeback).
    out_only = jax.block_until_ready(
        attention_forward(x, w_qkv, w_out, b_out, heads, return_attention=False))

    ref_out, ref_attn = _reference_forward(x, w_qkv, w_out, b_out, heads)
    assert out.shape == (B, N, D) and attention.shape == (B, heads, N, N)
    # Relaxed tolerance: bf16 MXU operands (f32 accumulation) and the
    # 1/sqrt(dh) scale folded into the Q weights change rounding vs the f32
    # reference.
    np.testing.assert_allclose(np.asarray(out), np.asarray(ref_out),
                               rtol=2e-2, atol=3e-3)
    np.testing.assert_allclose(np.asarray(attention), np.asarray(ref_attn),
                               rtol=2e-2, atol=3e-3)
    np.testing.assert_allclose(np.asarray(out_only), np.asarray(out),
                               rtol=1e-5, atol=1e-5)

    print("KERNEL_OK")
</pallas_src>

<mosaic_0001>
module attributes {stable_mosaic.version = 11 : i64} {
  func.func @_attention_kernel(%arg0: i32, %arg1: memref<16x32xf32, #tpu.memory_space<vmem>>, %arg2: memref<4x32x8xbf16, #tpu.memory_space<vmem>>, %arg3: memref<4x32x8xbf16, #tpu.memory_space<vmem>>, %arg4: memref<4x32x8xbf16, #tpu.memory_space<vmem>>, %arg5: memref<4x8x32xbf16, #tpu.memory_space<vmem>>, %arg6: memref<1x32xf32, #tpu.memory_space<vmem>>, %arg7: memref<16x32xf32, #tpu.memory_space<vmem>>, %arg8: memref<2x4x8x8xf32, #tpu.memory_space<vmem>>) attributes {dimension_semantics = [#tpu.dimension_semantics<parallel>], iteration_bounds = array<i64: 1>, scalar_prefetch = 0 : i64, scratch_operands = 0 : i64, tpu.core_type = #tpu.core_type<tc>, window_params = [{transform_indices = @transform_0, window_bounds = array<i64: 16, 32>}, {pipeline_mode = #tpu.pipeline_mode<synchronous>, transform_indices = @transform_1, window_bounds = array<i64: 4, 32, 8>}, {pipeline_mode = #tpu.pipeline_mode<synchronous>, transform_indices = @transform_2, window_bounds = array<i64: 4, 32, 8>}, {pipeline_mode = #tpu.pipeline_mode<synchronous>, transform_indices = @transform_3, window_bounds = array<i64: 4, 32, 8>}, {pipeline_mode = #tpu.pipeline_mode<synchronous>, transform_indices = @transform_4, window_bounds = array<i64: 4, 8, 32>}, {pipeline_mode = #tpu.pipeline_mode<synchronous>, transform_indices = @transform_5, window_bounds = array<i64: 1, 32>}, {transform_indices = @transform_6, window_bounds = array<i64: 16, 32>}, {transform_indices = @transform_7, window_bounds = array<i64: 2, 4, 8, 8>}]} {
    %c0 = arith.constant 0 : index
    %c0_0 = arith.constant 0 : index
    %0 = vector.load %arg1[%c0, %c0_0] : memref<16x32xf32, #tpu.memory_space<vmem>>, vector<16x32xf32>
    %1 = arith.truncf %0 : vector<16x32xf32> to vector<16x32xbf16>
    %cst = arith.constant 0.000000e+00 : f32
    %2 = vector.broadcast %cst : f32 to vector<16x32xf32>
    %c0_1 = arith.constant 0 : index
    %c0_2 = arith.constant 0 : index
    %c0_3 = arith.constant 0 : index
    %3 = vector.load %arg2[%c0_1, %c0_2, %c0_3] : memref<4x32x8xbf16, #tpu.memory_space<vmem>>, vector<1x32x8xbf16>
    %4 = vector.shape_cast %3 : vector<1x32x8xbf16> to vector<32x8xbf16>
    %c0_4 = arith.constant 0 : index
    %c0_5 = arith.constant 0 : index
    %c0_6 = arith.constant 0 : index
    %5 = vector.load %arg3[%c0_4, %c0_5, %c0_6] : memref<4x32x8xbf16, #tpu.memory_space<vmem>>, vector<1x32x8xbf16>
    %6 = vector.shape_cast %5 : vector<1x32x8xbf16> to vector<32x8xbf16>
    %c0_7 = arith.constant 0 : index
    %c0_8 = arith.constant 0 : index
    %c0_9 = arith.constant 0 : index
    %7 = vector.load %arg4[%c0_7, %c0_8, %c0_9] : memref<4x32x8xbf16, #tpu.memory_space<vmem>>, vector<1x32x8xbf16>
    %8 = vector.shape_cast %7 : vector<1x32x8xbf16> to vector<32x8xbf16>
    %c0_10 = arith.constant 0 : index
    %c0_11 = arith.constant 0 : index
    %c0_12 = arith.constant 0 : index
    %9 = vector.load %arg5[%c0_10, %c0_11, %c0_12] : memref<4x8x32xbf16, #tpu.memory_space<vmem>>, vector<1x8x32xbf16>
    %10 = vector.shape_cast %9 : vector<1x8x32xbf16> to vector<8x32xbf16>
    %cst_13 = arith.constant dense<0.000000e+00> : vector<16x8xf32>
    %11 = tpu.matmul %1, %4, %cst_13 {dimension_numbers = #tpu.dot_dimension_numbers<[1], [0], [0], [1], [0, 0, 1, 1], [], []>} : vector<16x32xbf16>, vector<32x8xbf16>, vector<16x8xf32> -> vector<16x8xf32>
    %cst_14 = arith.constant dense<0.000000e+00> : vector<16x8xf32>
    %12 = tpu.matmul %1, %6, %cst_14 {dimension_numbers = #tpu.dot_dimension_numbers<[1], [0], [0], [1], [0, 0, 1, 1], [], []>} : vector<16x32xbf16>, vector<32x8xbf16>, vector<16x8xf32> -> vector<16x8xf32>
    %cst_15 = arith.constant dense<0.000000e+00> : vector<16x8xf32>
    %13 = tpu.matmul %1, %8, %cst_15 {dimension_numbers = #tpu.dot_dimension_numbers<[1], [0], [0], [1], [0, 0, 1, 1], [], []>} : vector<16x32xbf16>, vector<32x8xbf16>, vector<16x8xf32> -> vector<16x8xf32>
    %14 = vector.shape_cast %11 : vector<16x8xf32> to vector<2x8x8xf32>
    %15 = arith.truncf %14 : vector<2x8x8xf32> to vector<2x8x8xbf16>
    %16 = vector.shape_cast %12 : vector<16x8xf32> to vector<2x8x8xf32>
    %17 = arith.truncf %16 : vector<2x8x8xf32> to vector<2x8x8xbf16>
    %18 = vector.shape_cast %13 : vector<16x8xf32> to vector<2x8x8xf32>
    %19 = arith.truncf %18 : vector<2x8x8xf32> to vector<2x8x8xbf16>
    "tpu.trace_start"() <{level = 10 : i32, message = "bqd,bkd->bqk"}> : () -> ()
    %cst_16 = arith.constant dense<0.000000e+00> : vector<2x8x8xf32>
    %20 = tpu.matmul %15, %17, %cst_16 {dimension_numbers = #tpu.dot_dimension_numbers<[2], [2], [1], [1], [0, 0, 0, 1, 1, 1], [0], [0]>} : vector<2x8x8xbf16>, vector<2x8x8xbf16>, vector<2x8x8xf32> -> vector<2x8x8xf32>
    "tpu.trace_stop"() : () -> ()
    %cst_17 = arith.constant dense<0xFF800000> : vector<2x8xf32>
    %21 = vector.multi_reduction <maximumf>, %20, %cst_17 [2] : vector<2x8x8xf32> to vector<2x8xf32>
    %22 = vector.shape_cast %21 : vector<2x8xf32> to vector<2x8x1xf32>
    %23 = vector.broadcast %22 : vector<2x8x1xf32> to vector<2x8x8xf32>
    %24 = arith.subf %20, %23 : vector<2x8x8xf32>
    %25 = math.exp %24 : vector<2x8x8xf32>
    %cst_18 = arith.constant dense<0.000000e+00> : vector<2x8xf32>
    %26 = vector.multi_reduction <add>, %25, %cst_18 [2] : vector<2x8x8xf32> to vector<2x8xf32>
    %27 = vector.shape_cast %26 : vector<2x8xf32> to vector<2x8x1xf32>
    %28 = tpu.reciprocal %27 : vector<2x8x1xf32> -> vector<2x8x1xf32>
    %29 = vector.broadcast %28 : vector<2x8x1xf32> to vector<2x8x8xf32>
    %30 = arith.mulf %25, %29 : vector<2x8x8xf32>
    %c0_19 = arith.constant 0 : index
    %c0_20 = arith.constant 0 : index
    %c0_21 = arith.constant 0 : index
    %c0_22 = arith.constant 0 : index
    %31 = vector.load %arg8[%c0_19, %c0_20, %c0_21, %c0_22] : memref<2x4x8x8xf32, #tpu.memory_space<vmem>>, vector<2x1x8x8xf32>
    %32 = vector.shape_cast %31 : vector<2x1x8x8xf32> to vector<2x8x8xf32>
    %33 = vector.shape_cast %30 : vector<2x8x8xf32> to vector<2x1x8x8xf32>
    tpu.vector_store %arg8[%c0_19, %c0_20, %c0_21, %c0_22], %33 {strides = array<i32>} : memref<2x4x8x8xf32, #tpu.memory_space<vmem>>, vector<2x1x8x8xf32>,
    %34 = arith.truncf %30 : vector<2x8x8xf32> to vector<2x8x8xbf16>
    "tpu.trace_start"() <{level = 10 : i32, message = "bqk,bkd->bqd"}> : () -> ()
    %cst_23 = arith.constant dense<0.000000e+00> : vector<2x8x8xf32>
    %35 = tpu.matmul %34, %19, %cst_23 {dimension_numbers = #tpu.dot_dimension_numbers<[2], [1], [1], [2], [0, 0, 0, 1, 1, 2], [0], [0]>} : vector<2x8x8xbf16>, vector<2x8x8xbf16>, vector<2x8x8xf32> -> vector<2x8x8xf32>
    "tpu.trace_stop"() : () -> ()
    %36 = vector.shape_cast %35 : vector<2x8x8xf32> to vector<16x8xf32>
    %37 = arith.truncf %36 : vector<16x8xf32> to vector<16x8xbf16>
    %cst_24 = arith.constant dense<0.000000e+00> : vector<16x32xf32>
    %38 = tpu.matmul %37, %10, %cst_24 {dimension_numbers = #tpu.dot_dimension_numbers<[1], [0], [0], [1], [0, 0, 1, 1], [], []>} : vector<16x8xbf16>, vector<8x32xbf16>, vector<16x32xf32> -> vector<16x32xf32>
    %39 = arith.addf %2, %38 : vector<16x32xf32>
    %c1 = arith.constant 1 : index
    %c0_25 = arith.constant 0 : index
    %c0_26 = arith.constant 0 : index
    %40 = vector.load %arg2[%c1, %c0_25, %c0_26] : memref<4x32x8xbf16, #tpu.memory_space<vmem>>, vector<1x32x8xbf16>
    %41 = vector.shape_cast %40 : vector<1x32x8xbf16> to vector<32x8xbf16>
    %c1_27 = arith.constant 1 : index
    %c0_28 = arith.constant 0 : index
    %c0_29 = arith.constant 0 : index
    %42 = vector.load %arg3[%c1_27, %c0_28, %c0_29] : memref<4x32x8xbf16, #tpu.memory_space<vmem>>, vector<1x32x8xbf16>
    %43 = vector.shape_cast %42 : vector<1x32x8xbf16> to vector<32x8xbf16>
    %c1_30 = arith.constant 1 : index
    %c0_31 = arith.constant 0 : index
    %c0_32 = arith.constant 0 : index
    %44 = vector.load %arg4[%c1_30, %c0_31, %c0_32] : memref<4x32x8xbf16, #tpu.memory_space<vmem>>, vector<1x32x8xbf16>
    %45 = vector.shape_cast %44 : vector<1x32x8xbf16> to vector<32x8xbf16>
    %c1_33 = arith.constant 1 : index
    %c0_34 = arith.constant 0 : index
    %c0_35 = arith.constant 0 : index
    %46 = vector.load %arg5[%c1_33, %c0_34, %c0_35] : memref<4x8x32xbf16, #tpu.memory_space<vmem>>, vector<1x8x32xbf16>
    %47 = vector.shape_cast %46 : vector<1x8x32xbf16> to vector<8x32xbf16>
    %cst_36 = arith.constant dense<0.000000e+00> : vector<16x8xf32>
    %48 = tpu.matmul %1, %41, %cst_36 {dimension_numbers = #tpu.dot_dimension_numbers<[1], [0], [0], [1], [0, 0, 1, 1], [], []>} : vector<16x32xbf16>, vector<32x8xbf16>, vector<16x8xf32> -> vector<16x8xf32>
    %cst_37 = arith.constant dense<0.000000e+00> : vector<16x8xf32>
    %49 = tpu.matmul %1, %43, %cst_37 {dimension_numbers = #tpu.dot_dimension_numbers<[1], [0], [0], [1], [0, 0, 1, 1], [], []>} : vector<16x32xbf16>, vector<32x8xbf16>, vector<16x8xf32> -> vector<16x8xf32>
    %cst_38 = arith.constant dense<0.000000e+00> : vector<16x8xf32>
    %50 = tpu.matmul %1, %45, %cst_38 {dimension_numbers = #tpu.dot_dimension_numbers<[1], [0], [0], [1], [0, 0, 1, 1], [], []>} : vector<16x32xbf16>, vector<32x8xbf16>, vector<16x8xf32> -> vector<16x8xf32>
    %51 = vector.shape_cast %48 : vector<16x8xf32> to vector<2x8x8xf32>
    %52 = arith.truncf %51 : vector<2x8x8xf32> to vector<2x8x8xbf16>
    %53 = vector.shape_cast %49 : vector<16x8xf32> to vector<2x8x8xf32>
    %54 = arith.truncf %53 : vector<2x8x8xf32> to vector<2x8x8xbf16>
    %55 = vector.shape_cast %50 : vector<16x8xf32> to vector<2x8x8xf32>
    %56 = arith.truncf %55 : vector<2x8x8xf32> to vector<2x8x8xbf16>
    "tpu.trace_start"() <{level = 10 : i32, message = "bqd,bkd->bqk"}> : () -> ()
    %cst_39 = arith.constant dense<0.000000e+00> : vector<2x8x8xf32>
    %57 = tpu.matmul %52, %54, %cst_39 {dimension_numbers = #tpu.dot_dimension_numbers<[2], [2], [1], [1], [0, 0, 0, 1, 1, 1], [0], [0]>} : vector<2x8x8xbf16>, vector<2x8x8xbf16>, vector<2x8x8xf32> -> vector<2x8x8xf32>
    "tpu.trace_stop"() : () -> ()
    %cst_40 = arith.constant dense<0xFF800000> : vector<2x8xf32>
    %58 = vector.multi_reduction <maximumf>, %57, %cst_40 [2] : vector<2x8x8xf32> to vector<2x8xf32>
    %59 = vector.shape_cast %58 : vector<2x8xf32> to vector<2x8x1xf32>
    %60 = vector.broadcast %59 : vector<2x8x1xf32> to vector<2x8x8xf32>
    %61 = arith.subf %57, %60 : vector<2x8x8xf32>
    %62 = math.exp %61 : vector<2x8x8xf32>
    %cst_41 = arith.constant dense<0.000000e+00> : vector<2x8xf32>
    %63 = vector.multi_reduction <add>, %62, %cst_41 [2] : vector<2x8x8xf32> to vector<2x8xf32>
    %64 = vector.shape_cast %63 : vector<2x8xf32> to vector<2x8x1xf32>
    %65 = tpu.reciprocal %64 : vector<2x8x1xf32> -> vector<2x8x1xf32>
    %66 = vector.broadcast %65 : vector<2x8x1xf32> to vector<2x8x8xf32>
    %67 = arith.mulf %62, %66 : vector<2x8x8xf32>
    %c0_42 = arith.constant 0 : index
    %c1_43 = arith.constant 1 : index
    %c0_44 = arith.constant 0 : index
    %c0_45 = arith.constant 0 : index
    %68 = vector.load %arg8[%c0_42, %c1_43, %c0_44, %c0_45] : memref<2x4x8x8xf32, #tpu.memory_space<vmem>>, vector<2x1x8x8xf32>
    %69 = vector.shape_cast %68 : vector<2x1x8x8xf32> to vector<2x8x8xf32>
    %70 = vector.shape_cast %67 : vector<2x8x8xf32> to vector<2x1x8x8xf32>
    tpu.vector_store %arg8[%c0_42, %c1_43, %c0_44, %c0_45], %70 {strides = array<i32>} : memref<2x4x8x8xf32, #tpu.memory_space<vmem>>, vector<2x1x8x8xf32>,
    %71 = arith.truncf %67 : vector<2x8x8xf32> to vector<2x8x8xbf16>
    "tpu.trace_start"() <{level = 10 : i32, message = "bqk,bkd->bqd"}> : () -> ()
    %cst_46 = arith.constant dense<0.000000e+00> : vector<2x8x8xf32>
    %72 = tpu.matmul %71, %56, %cst_46 {dimension_numbers = #tpu.dot_dimension_numbers<[2], [1], [1], [2], [0, 0, 0, 1, 1, 2], [0], [0]>} : vector<2x8x8xbf16>, vector<2x8x8xbf16>, vector<2x8x8xf32> -> vector<2x8x8xf32>
    "tpu.trace_stop"() : () -> ()
    %73 = vector.shape_cast %72 : vector<2x8x8xf32> to vector<16x8xf32>
    %74 = arith.truncf %73 : vector<16x8xf32> to vector<16x8xbf16>
    %cst_47 = arith.constant dense<0.000000e+00> : vector<16x32xf32>
    %75 = tpu.matmul %74, %47, %cst_47 {dimension_numbers = #tpu.dot_dimension_numbers<[1], [0], [0], [1], [0, 0, 1, 1], [], []>} : vector<16x8xbf16>, vector<8x32xbf16>, vector<16x32xf32> -> vector<16x32xf32>
    %76 = arith.addf %39, %75 : vector<16x32xf32>
    %c2 = arith.constant 2 : index
    %c0_48 = arith.constant 0 : index
    %c0_49 = arith.constant 0 : index
    %77 = vector.load %arg2[%c2, %c0_48, %c0_49] : memref<4x32x8xbf16, #tpu.memory_space<vmem>>, vector<1x32x8xbf16>
    %78 = vector.shape_cast %77 : vector<1x32x8xbf16> to vector<32x8xbf16>
    %c2_50 = arith.constant 2 : index
    %c0_51 = arith.constant 0 : index
    %c0_52 = arith.constant 0 : index
    %79 = vector.load %arg3[%c2_50, %c0_51, %c0_52] : memref<4x32x8xbf16, #tpu.memory_space<vmem>>, vector<1x32x8xbf16>
    %80 = vector.shape_cast %79 : vector<1x32x8xbf16> to vector<32x8xbf16>
    %c2_53 = arith.constant 2 : index
    %c0_54 = arith.constant 0 : index
    %c0_55 = arith.constant 0 : index
    %81 = vector.load %arg4[%c2_53, %c0_54, %c0_55] : memref<4x32x8xbf16, #tpu.memory_space<vmem>>, vector<1x32x8xbf16>
    %82 = vector.shape_cast %81 : vector<1x32x8xbf16> to vector<32x8xbf16>
    %c2_56 = arith.constant 2 : index
    %c0_57 = arith.constant 0 : index
    %c0_58 = arith.constant 0 : index
    %83 = vector.load %arg5[%c2_56, %c0_57, %c0_58] : memref<4x8x32xbf16, #tpu.memory_space<vmem>>, vector<1x8x32xbf16>
    %84 = vector.shape_cast %83 : vector<1x8x32xbf16> to vector<8x32xbf16>
    %cst_59 = arith.constant dense<0.000000e+00> : vector<16x8xf32>
    %85 = tpu.matmul %1, %78, %cst_59 {dimension_numbers = #tpu.dot_dimension_numbers<[1], [0], [0], [1], [0, 0, 1, 1], [], []>} : vector<16x32xbf16>, vector<32x8xbf16>, vector<16x8xf32> -> vector<16x8xf32>
    %cst_60 = arith.constant dense<0.000000e+00> : vector<16x8xf32>
    %86 = tpu.matmul %1, %80, %cst_60 {dimension_numbers = #tpu.dot_dimension_numbers<[1], [0], [0], [1], [0, 0, 1, 1], [], []>} : vector<16x32xbf16>, vector<32x8xbf16>, vector<16x8xf32> -> vector<16x8xf32>
    %cst_61 = arith.constant dense<0.000000e+00> : vector<16x8xf32>
    %87 = tpu.matmul %1, %82, %cst_61 {dimension_numbers = #tpu.dot_dimension_numbers<[1], [0], [0], [1], [0, 0, 1, 1], [], []>} : vector<16x32xbf16>, vector<32x8xbf16>, vector<16x8xf32> -> vector<16x8xf32>
    %88 = vector.shape_cast %85 : vector<16x8xf32> to vector<2x8x8xf32>
    %89 = arith.truncf %88 : vector<2x8x8xf32> to vector<2x8x8xbf16>
    %90 = vector.shape_cast %86 : vector<16x8xf32> to vector<2x8x8xf32>
    %91 = arith.truncf %90 : vector<2x8x8xf32> to vector<2x8x8xbf16>
    %92 = vector.shape_cast %87 : vector<16x8xf32> to vector<2x8x8xf32>
    %93 = arith.truncf %92 : vector<2x8x8xf32> to vector<2x8x8xbf16>
    "tpu.trace_start"() <{level = 10 : i32, message = "bqd,bkd->bqk"}> : () -> ()
    %cst_62 = arith.constant dense<0.000000e+00> : vector<2x8x8xf32>
    %94 = tpu.matmul %89, %91, %cst_62 {dimension_numbers = #tpu.dot_dimension_numbers<[2], [2], [1], [1], [0, 0, 0, 1, 1, 1], [0], [0]>} : vector<2x8x8xbf16>, vector<2x8x8xbf16>, vector<2x8x8xf32> -> vector<2x8x8xf32>
    "tpu.trace_stop"() : () -> ()
    %cst_63 = arith.constant dense<0xFF800000> : vector<2x8xf32>
    %95 = vector.multi_reduction <maximumf>, %94, %cst_63 [2] : vector<2x8x8xf32> to vector<2x8xf32>
    %96 = vector.shape_cast %95 : vector<2x8xf32> to vector<2x8x1xf32>
    %97 = vector.broadcast %96 : vector<2x8x1xf32> to vector<2x8x8xf32>
    %98 = arith.subf %94, %97 : vector<2x8x8xf32>
    %99 = math.exp %98 : vector<2x8x8xf32>
    %cst_64 = arith.constant dense<0.000000e+00> : vector<2x8xf32>
    %100 = vector.multi_reduction <add>, %99, %cst_64 [2] : vector<2x8x8xf32> to vector<2x8xf32>
    %101 = vector.shape_cast %100 : vector<2x8xf32> to vector<2x8x1xf32>
    %102 = tpu.reciprocal %101 : vector<2x8x1xf32> -> vector<2x8x1xf32>
    %103 = vector.broadcast %102 : vector<2x8x1xf32> to vector<2x8x8xf32>
    %104 = arith.mulf %99, %103 : vector<2x8x8xf32>
    %c0_65 = arith.constant 0 : index
    %c2_66 = arith.constant 2 : index
    %c0_67 = arith.constant 0 : index
    %c0_68 = arith.constant 0 : index
    %105 = vector.load %arg8[%c0_65, %c2_66, %c0_67, %c0_68] : memref<2x4x8x8xf32, #tpu.memory_space<vmem>>, vector<2x1x8x8xf32>
    %106 = vector.shape_cast %105 : vector<2x1x8x8xf32> to vector<2x8x8xf32>
    %107 = vector.shape_cast %104 : vector<2x8x8xf32> to vector<2x1x8x8xf32>
    tpu.vector_store %arg8[%c0_65, %c2_66, %c0_67, %c0_68], %107 {strides = array<i32>} : memref<2x4x8x8xf32, #tpu.memory_space<vmem>>, vector<2x1x8x8xf32>,
    %108 = arith.truncf %104 : vector<2x8x8xf32> to vector<2x8x8xbf16>
    "tpu.trace_start"() <{level = 10 : i32, message = "bqk,bkd->bqd"}> : () -> ()
    %cst_69 = arith.constant dense<0.000000e+00> : vector<2x8x8xf32>
    %109 = tpu.matmul %108, %93, %cst_69 {dimension_numbers = #tpu.dot_dimension_numbers<[2], [1], [1], [2], [0, 0, 0, 1, 1, 2], [0], [0]>} : vector<2x8x8xbf16>, vector<2x8x8xbf16>, vector<2x8x8xf32> -> vector<2x8x8xf32>
    "tpu.trace_stop"() : () -> ()
    %110 = vector.shape_cast %109 : vector<2x8x8xf32> to vector<16x8xf32>
    %111 = arith.truncf %110 : vector<16x8xf32> to vector<16x8xbf16>
    %cst_70 = arith.constant dense<0.000000e+00> : vector<16x32xf32>
    %112 = tpu.matmul %111, %84, %cst_70 {dimension_numbers = #tpu.dot_dimension_numbers<[1], [0], [0], [1], [0, 0, 1, 1], [], []>} : vector<16x8xbf16>, vector<8x32xbf16>, vector<16x32xf32> -> vector<16x32xf32>
    %113 = arith.addf %76, %112 : vector<16x32xf32>
    %c3 = arith.constant 3 : index
    %c0_71 = arith.constant 0 : index
    %c0_72 = arith.constant 0 : index
    %114 = vector.load %arg2[%c3, %c0_71, %c0_72] : memref<4x32x8xbf16, #tpu.memory_space<vmem>>, vector<1x32x8xbf16>
    %115 = vector.shape_cast %114 : vector<1x32x8xbf16> to vector<32x8xbf16>
    %c3_73 = arith.constant 3 : index
    %c0_74 = arith.constant 0 : index
    %c0_75 = arith.constant 0 : index
    %116 = vector.load %arg3[%c3_73, %c0_74, %c0_75] : memref<4x32x8xbf16, #tpu.memory_space<vmem>>, vector<1x32x8xbf16>
    %117 = vector.shape_cast %116 : vector<1x32x8xbf16> to vector<32x8xbf16>
    %c3_76 = arith.constant 3 : index
    %c0_77 = arith.constant 0 : index
    %c0_78 = arith.constant 0 : index
    %118 = vector.load %arg4[%c3_76, %c0_77, %c0_78] : memref<4x32x8xbf16, #tpu.memory_space<vmem>>, vector<1x32x8xbf16>
    %119 = vector.shape_cast %118 : vector<1x32x8xbf16> to vector<32x8xbf16>
    %c3_79 = arith.constant 3 : index
    %c0_80 = arith.constant 0 : index
    %c0_81 = arith.constant 0 : index
    %120 = vector.load %arg5[%c3_79, %c0_80, %c0_81] : memref<4x8x32xbf16, #tpu.memory_space<vmem>>, vector<1x8x32xbf16>
    %121 = vector.shape_cast %120 : vector<1x8x32xbf16> to vector<8x32xbf16>
    %cst_82 = arith.constant dense<0.000000e+00> : vector<16x8xf32>
    %122 = tpu.matmul %1, %115, %cst_82 {dimension_numbers = #tpu.dot_dimension_numbers<[1], [0], [0], [1], [0, 0, 1, 1], [], []>} : vector<16x32xbf16>, vector<32x8xbf16>, vector<16x8xf32> -> vector<16x8xf32>
    %cst_83 = arith.constant dense<0.000000e+00> : vector<16x8xf32>
    %123 = tpu.matmul %1, %117, %cst_83 {dimension_numbers = #tpu.dot_dimension_numbers<[1], [0], [0], [1], [0, 0, 1, 1], [], []>} : vector<16x32xbf16>, vector<32x8xbf16>, vector<16x8xf32> -> vector<16x8xf32>
    %cst_84 = arith.constant dense<0.000000e+00> : vector<16x8xf32>
    %124 = tpu.matmul %1, %119, %cst_84 {dimension_numbers = #tpu.dot_dimension_numbers<[1], [0], [0], [1], [0, 0, 1, 1], [], []>} : vector<16x32xbf16>, vector<32x8xbf16>, vector<16x8xf32> -> vector<16x8xf32>
    %125 = vector.shape_cast %122 : vector<16x8xf32> to vector<2x8x8xf32>
    %126 = arith.truncf %125 : vector<2x8x8xf32> to vector<2x8x8xbf16>
    %127 = vector.shape_cast %123 : vector<16x8xf32> to vector<2x8x8xf32>
    %128 = arith.truncf %127 : vector<2x8x8xf32> to vector<2x8x8xbf16>
    %129 = vector.shape_cast %124 : vector<16x8xf32> to vector<2x8x8xf32>
    %130 = arith.truncf %129 : vector<2x8x8xf32> to vector<2x8x8xbf16>
    "tpu.trace_start"() <{level = 10 : i32, message = "bqd,bkd->bqk"}> : () -> ()
    %cst_85 = arith.constant dense<0.000000e+00> : vector<2x8x8xf32>
    %131 = tpu.matmul %126, %128, %cst_85 {dimension_numbers = #tpu.dot_dimension_numbers<[2], [2], [1], [1], [0, 0, 0, 1, 1, 1], [0], [0]>} : vector<2x8x8xbf16>, vector<2x8x8xbf16>, vector<2x8x8xf32> -> vector<2x8x8xf32>
    "tpu.trace_stop"() : () -> ()
    %cst_86 = arith.constant dense<0xFF800000> : vector<2x8xf32>
    %132 = vector.multi_reduction <maximumf>, %131, %cst_86 [2] : vector<2x8x8xf32> to vector<2x8xf32>
    %133 = vector.shape_cast %132 : vector<2x8xf32> to vector<2x8x1xf32>
    %134 = vector.broadcast %133 : vector<2x8x1xf32> to vector<2x8x8xf32>
    %135 = arith.subf %131, %134 : vector<2x8x8xf32>
    %136 = math.exp %135 : vector<2x8x8xf32>
    %cst_87 = arith.constant dense<0.000000e+00> : vector<2x8xf32>
    %137 = vector.multi_reduction <add>, %136, %cst_87 [2] : vector<2x8x8xf32> to vector<2x8xf32>
    %138 = vector.shape_cast %137 : vector<2x8xf32> to vector<2x8x1xf32>
    %139 = tpu.reciprocal %138 : vector<2x8x1xf32> -> vector<2x8x1xf32>
    %140 = vector.broadcast %139 : vector<2x8x1xf32> to vector<2x8x8xf32>
    %141 = arith.mulf %136, %140 : vector<2x8x8xf32>
    %c0_88 = arith.constant 0 : index
    %c3_89 = arith.constant 3 : index
    %c0_90 = arith.constant 0 : index
    %c0_91 = arith.constant 0 : index
    %142 = vector.load %arg8[%c0_88, %c3_89, %c0_90, %c0_91] : memref<2x4x8x8xf32, #tpu.memory_space<vmem>>, vector<2x1x8x8xf32>
    %143 = vector.shape_cast %142 : vector<2x1x8x8xf32> to vector<2x8x8xf32>
    %144 = vector.shape_cast %141 : vector<2x8x8xf32> to vector<2x1x8x8xf32>
    tpu.vector_store %arg8[%c0_88, %c3_89, %c0_90, %c0_91], %144 {strides = array<i32>} : memref<2x4x8x8xf32, #tpu.memory_space<vmem>>, vector<2x1x8x8xf32>,
    %145 = arith.truncf %141 : vector<2x8x8xf32> to vector<2x8x8xbf16>
    "tpu.trace_start"() <{level = 10 : i32, message = "bqk,bkd->bqd"}> : () -> ()
    %cst_92 = arith.constant dense<0.000000e+00> : vector<2x8x8xf32>
    %146 = tpu.matmul %145, %130, %cst_92 {dimension_numbers = #tpu.dot_dimension_numbers<[2], [1], [1], [2], [0, 0, 0, 1, 1, 2], [0], [0]>} : vector<2x8x8xbf16>, vector<2x8x8xbf16>, vector<2x8x8xf32> -> vector<2x8x8xf32>
    "tpu.trace_stop"() : () -> ()
    %147 = vector.shape_cast %146 : vector<2x8x8xf32> to vector<16x8xf32>
    %148 = arith.truncf %147 : vector<16x8xf32> to vector<16x8xbf16>
    %cst_93 = arith.constant dense<0.000000e+00> : vector<16x32xf32>
    %149 = tpu.matmul %148, %121, %cst_93 {dimension_numbers = #tpu.dot_dimension_numbers<[1], [0], [0], [1], [0, 0, 1, 1], [], []>} : vector<16x8xbf16>, vector<8x32xbf16>, vector<16x32xf32> -> vector<16x32xf32>
    %150 = arith.addf %113, %149 : vector<16x32xf32>
    %c0_94 = arith.constant 0 : index
    %c0_95 = arith.constant 0 : index
    %151 = vector.load %arg6[%c0_94, %c0_95] : memref<1x32xf32, #tpu.memory_space<vmem>>, vector<1x32xf32>
    %152 = vector.broadcast %151 : vector<1x32xf32> to vector<16x32xf32>
    %153 = arith.addf %150, %152 : vector<16x32xf32>
    %c0_96 = arith.constant 0 : index
    %c0_97 = arith.constant 0 : index
    %154 = vector.load %arg7[%c0_96, %c0_97] : memref<16x32xf32, #tpu.memory_space<vmem>>, vector<16x32xf32>
    tpu.vector_store %arg7[%c0_96, %c0_97], %153 {strides = array<i32>} : memref<16x32xf32, #tpu.memory_space<vmem>>, vector<16x32xf32>,
    return
  }
  func.func @transform_0(%arg0: i32) -> (i32, i32) {
    %c0_i32 = arith.constant 0 : i32
    %c0_i32_0 = arith.constant 0 : i32
    return %arg0, %c0_i32 : i32, i32
  }
  func.func @transform_1(%arg0: i32) -> (i32, i32, i32) {
    %c0_i32 = arith.constant 0 : i32
    %c0_i32_0 = arith.constant 0 : i32
    %c0_i32_1 = arith.constant 0 : i32
    %c0_i32_2 = arith.constant 0 : i32
    return %c0_i32, %c0_i32_0, %c0_i32_1 : i32, i32, i32
  }
  func.func @transform_2(%arg0: i32) -> (i32, i32, i32) {
    %c0_i32 = arith.constant 0 : i32
    %c0_i32_0 = arith.constant 0 : i32
    %c0_i32_1 = arith.constant 0 : i32
    %c0_i32_2 = arith.constant 0 : i32
    return %c0_i32, %c0_i32_0, %c0_i32_1 : i32, i32, i32
  }
  func.func @transform_3(%arg0: i32) -> (i32, i32, i32) {
    %c0_i32 = arith.constant 0 : i32
    %c0_i32_0 = arith.constant 0 : i32
    %c0_i32_1 = arith.constant 0 : i32
    %c0_i32_2 = arith.constant 0 : i32
    return %c0_i32, %c0_i32_0, %c0_i32_1 : i32, i32, i32
  }
  func.func @transform_4(%arg0: i32) -> (i32, i32, i32) {
    %c0_i32 = arith.constant 0 : i32
    %c0_i32_0 = arith.constant 0 : i32
    %c0_i32_1 = arith.constant 0 : i32
    %c0_i32_2 = arith.constant 0 : i32
    return %c0_i32, %c0_i32_0, %c0_i32_1 : i32, i32, i32
  }
  func.func @transform_5(%arg0: i32) -> (i32, i32) {
    %c0_i32 = arith.constant 0 : i32
    %c0_i32_0 = arith.constant 0 : i32
    %c0_i32_1 = arith.constant 0 : i32
    return %c0_i32, %c0_i32_0 : i32, i32
  }
  func.func @transform_6(%arg0: i32) -> (i32, i32) {
    %c0_i32 = arith.constant 0 : i32
    %c0_i32_0 = arith.constant 0 : i32
    return %arg0, %c0_i32 : i32, i32
  }
  func.func @transform_7(%arg0: i32) -> (i32, i32, i32, i32) {
    %c0_i32 = arith.constant 0 : i32
    %c0_i32_0 = arith.constant 0 : i32
    %c0_i32_1 = arith.constant 0 : i32
    %c0_i32_2 = arith.constant 0 : i32
    return %arg0, %c0_i32, %c0_i32_0, %c0_i32_1 : i32, i32, i32, i32
  }
}

</mosaic_0001>

<bundles_post_ra>
// kernel: tpu_custom_call.1
= control target key start
LH: loop header
LB: loop body
LE: loop exit
PB: predicated region body
PF: predicated region fallthrough
CT: control target
= control target key end

     0   :  { %13 = vsyncpa [#allocation3], 0  ;;  %v2341_v1 = vmov 0.0   ;;  %vm2342_vm0 = vmmov 0   ;;  %vm56_vm1 = vcmask 261120   ;;  %s2731_s0 = inlined_call_operand.vmem [shape: f32[16,32], index: 0, kind: input, shape index: {}]   ;;  %s2732_s1 = inlined_call_operand.vmem [shape: bf16[4,32,8], index: 1, kind: input, shape index: {}]   ;;  %s2733_s2 = inlined_call_operand.vmem [shape: bf16[4,32,8], index: 2, kind: input, shape index: {}]   ;;  %s2734_s3 = inlined_call_operand.vmem [shape: bf16[4,32,8], index: 3, kind: input, shape index: {}]   ;;  %s2735_s4 = inlined_call_operand.vmem [shape: bf16[4,8,32], index: 4, kind: input, shape index: {}]   ;;  %s2736_s5 = inlined_call_operand.vmem [shape: f32[1,32], index: 5, kind: input, shape index: {}]   ;;  %s2737_s6 = inlined_call_operand.hbm [shape: f32[16,32], index: 6, kind: output, shape index: {0}]   ;;  %s2738_s7 = inlined_call_operand.hbm [shape: f32[2,4,8,8], index: 7, kind: output, shape index: {1}]  }
   0x1   :  { %v2237_v0 = vld [vmem:[%s2733_s2] sm:$0xff]   ;;  %2023 = vmatprep.subr.bf16.mxu1 %v2341_v1  ;;  %2015 = vmatprep.subr.bf16.mxu0 %v2341_v1  ;;  %v2238_v2 = vld [vmem:[%s2733_s2 + $0x8] sm:$0xff]  }
   0x2   :  { %2024 = vmatpush3.bf16.msra.mxu1 %v2237_v0  ;;  %v2239_v3 = vld [vmem:[%s2732_s1] sm:$0xff]   ;;  %2027 = vmatprep.mubr.msk.bf16.mxu1 %vm2342_vm0, %v2341_v1  ;;  %v29_v5 = vld [vmem:[%s2731_s0 + $0x8] sm:$0xff] }
   0x3   :  { %2025 = vmatprep.subr.bf16.mxu1 %v2341_v1  ;;  %v28_v4 = vld [vmem:[%s2731_s0] sm:$0xff]  ;;  %2019 = vmatprep.mubr.msk.bf16.mxu0 %vm2342_vm0, %v2341_v1  ;;  %v2240_v6 = vld [vmem:[%s2732_s1 + $0x8] sm:$0xff]  }
   0x4   :  { %2016 = vmatpush3.bf16.msra.mxu0 %v2239_v3  ;;  %v2412_v7 = vpack.c.bf16 %v29_v5, %v28_v4  ;;  %v2241_v8 = vld [vmem:[%s2734_s3] sm:$0xff]   ;;  %v2242_v9 = vld [vmem:[%s2734_s3 + $0x8] sm:$0xff]  }
   0x5   :  { %2017 = vmatprep.subr.bf16.mxu0 %v2341_v1 }
   0x6   :  { %2026 = vmatpush3.bf16.msra.mxu1 %v2238_v2 }
   0x7   :  { %2039 = vmatprep.subr.bf16.mxu1 %v2341_v1 }
   0x8   :  { %2018 = vmatpush3.bf16.msra.mxu0 %v2240_v6 }
   0x9   :  { %2028 = vmatmul.mubr.msk.bf16.vlgmr.msra.gmra.mrb[0].mxu1 %vm56_vm1, %v2412_v7  ;;  %2031 = vmatprep.subr.bf16.mxu0 %v2341_v1 }
   0xa   :  { %2041 = vmatprep.mubr.msk.bf16.mxu1 %vm2342_vm0, %v2341_v1 }
   0xb   :  { %2020 = vmatmul.mubr.msk.bf16.vlgmr.msra.gmra.mrb[0].mxu0 %vm56_vm1, %v2412_v7 }
   0xc   :  { %2032 = vmatpush3.bf16.msra.mxu0 %v2241_v8  ;;  %2035 = vmatprep.mubr.msk.bf16.mxu0 %vm2342_vm0, %v2341_v1 }
   0xd   :  { %2033 = vmatprep.subr.bf16.mxu0 %v2341_v1 }
  0x10   :  { %2034 = vmatpush3.bf16.msra.mxu0 %v2242_v9 }
  0x11   :  { %2045 = vmatprep.subr.bf16.mxu0 %v2341_v1 }
  0x12   :  { %14 = vsyncpa [#allocation5], 0  ;;  %vm213_vm2 = vcmask 64512   ;;  %vm335_vm3 = vcmask 1043456   ;;  %v2243_v56 = vld [vmem:[%s2733_s2 + $0x10] sm:$0xff]   ;;  %v2244_v60 = vld [vmem:[%s2733_s2 + $0x18] sm:$0xff]  }
  0x13   :  { %2036 = vmatmul.mubr.msk.bf16.vlgmr.msra.gmra.mrb[4].mxu0 %vm56_vm1, %v2412_v7  ;;  %v2245_v61 = vld [vmem:[%s2732_s1 + $0x10] sm:$0xff]   ;;  %v2246_v63 = vld [vmem:[%s2732_s1 + $0x18] sm:$0xff]  }
  0x14   :  { %2047 = vmatprep.mubr.msk.bf16.mxu0 %vm2342_vm0, %v2341_v1  ;;  %v2247_v0 = vld [vmem:[%s2734_s3 + $0x10] sm:$0xff]   ;;  %v2248_v2 = vld [vmem:[%s2734_s3 + $0x18] sm:$0xff]  }
  0xdc   :  { %v147_v10 = vpop.f32.mrb[0].mxu1 }
  0xdd   :  { %v209_v11 = vpack.c.bf16 %v147_v10, %v147_v10  ;;  %v2029_v12 = vpop.f32.mrb[1].mxu1 }
  0xde   :  { %v150_v13 = vpop.f32.mrb[2].mxu1  ;;  %v94_v14 = vpop.f32.mrb[0].mxu0 }
  0xdf   :  { %v218_v15 = vsel %vm213_vm2, %v209_v11, 0  ;;  %v210_v16 = vpack.c.bf16 %v150_v13, %v150_v13  ;;  %v2030_v17 = vpop.f32.mrb[3].mxu1  ;;  %v2021_v18 = vpop.f32.mrb[1].mxu0  ;;  %v207_v22 = vpack.c.bf16 %v94_v14, %v94_v14 }
  0xe0   :  { %2040 = vmatpush3.bf16.xpose.msra.mxu1 %v218_v15  ;;  %v97_v19 = vpop.f32.mrb[2].mxu0 }
  0xe1   :  { %v264_v20 = vsel %vm213_vm2, %v210_v16, 0  ;;  %v2022_v21 = vpop.f32.mrb[3].mxu0  ;;  %2051 = vmatprep.subr.bf16.mxu1 %v2341_v1  ;;  %v208_v24 = vpack.c.bf16 %v97_v19, %v97_v19 }
  0xe2   :  { %2046 = vmatpush3.bf16.xpose.msra.mxu0 %v264_v20 }
  0xe3   :  { %2057 = vmatprep.subr.bf16.mxu0 %v2341_v1 }
  0xe6   :  { %v200_v23 = vpop.f32.mrb[4].mxu0 }
  0xe7   :  { %2042 = vmatmul.mubr.msk.bf16.vlgmr.msra.gmra.mrb[4].mxu1 %vm213_vm2, %v207_v22  ;;  %v211_v25 = vpack.c.bf16 %v200_v23, %v200_v23  ;;  %v2037_v26 = vpop.f32.mrb[5].mxu0 }
  0xe8   :  { %v203_v27 = vpop.f32.mrb[6].mxu0  ;;  %2053 = vmatprep.mubr.msk.bf16.mxu1 %vm2342_vm0, %v2341_v1 }
  0xe9   :  { %2048 = vmatmul.mubr.msk.bf16.vlgmr.msra.gmra.mrb[8].mxu0 %vm213_vm2, %v208_v24  ;;  %v337_v28 = vsel %vm335_vm3, %v211_v25, 0  ;;  %v212_v29 = vpack.c.bf16 %v203_v27, %v203_v27  ;;  %v2038_v30 = vpop.f32.mrb[7].mxu0 }
  0xea   :  { %2052 = vmatpush3.bf16.msra.mxu1 %v337_v28  ;;  %2059 = vmatprep.mubr.msk.bf16.mxu0 %vm2342_vm0, %v2341_v1 }
  0xeb   :  { %v383_v31 = vsel %vm335_vm3, %v212_v29, 0  ;;  %2063 = vmatprep.subr.bf16.mxu1 %v2341_v1 }
  0xec   :  { %2058 = vmatpush3.bf16.msra.mxu0 %v383_v31 }
  0xed   :  { %2071 = vmatprep.subr.bf16.mxu0 %v2341_v1 }
 0x1ba   :  { %v254_v32 = vpop.f32.mrb[4].mxu1 }
 0x1bb   :  { %v2043_v33 = vpop.f32.mrb[5].mxu1  ;;  %v306_v41 = vsel %vm213_vm2, %v254_v32, -inf }
 0x1bc   :  { %v257_v34 = vpop.f32.mrb[6].mxu1  ;;  %v300_v35 = vpop.f32.mrb[8].mxu0 }
 0x1bd   :  { %v2044_v36 = vpop.f32.mrb[7].mxu1  ;;  %v2049_v37 = vpop.f32.mrb[9].mxu0  ;;  %v309_v38 = vsel %vm213_vm2, %v300_v35, -inf }
 0x1be   :  { %310 = vmax.xlane.f32.xlu0 %v309_v38  ;;  %v303_v39 = vpop.f32.mrb[10].mxu0 }
 0x1bf   :  { %v2050_v40 = vpop.f32.mrb[11].mxu0 }
 0x1c2   :  { %307 = vmax.xlane.f32.xlu0 %v306_v41 }
 0x24b   :  { %v311_v42 = vpop.xlane.xlu0 %310 }
 0x24c   :  { %v313_v43 = vsub.f32 %v300_v35, %v311_v42 }
 0x24e   :  { %v316_v44 = vmul.f32 1.442695, %v313_v43 }
 0x24f   :  { %v308_v45 = vpop.xlane.xlu0 %307 }
 0x250   :  { %2261 = vpow2.f32 %v316_v44  ;;  %v312_v46 = vsub.f32 %v254_v32, %v308_v45 }
 0x252   :  { %v314_v47 = vmul.f32 1.442695, %v312_v46 }
 0x254   :  { %2263 = vpow2.f32 %v314_v47 }
 0x25a   :  { %v2262_v48 = vpop.eup %2261 }
 0x25b   :  { %v321_v49 = vsel %vm213_vm2, %v2262_v48, 0.0 }
 0x25c   :  { %322 = vadd.xlane.f32.xlu1 %v321_v49 }
 0x25e   :  { %v2264_v50 = vpop.eup %2263 }
 0x25f   :  { %v318_v51 = vsel %vm213_vm2, %v2264_v50, 0.0 }
 0x260   :  { %319 = vadd.xlane.f32.xlu1 %v318_v51 }
 0x2e9   :  { %v323_v52 = vpop.xlane.xlu1 %322 }
 0x2ea   :  { %2265 = vrcp.f32 %v323_v52 }
 0x2ed   :  { %v320_v53 = vpop.xlane.xlu1 %319 }
 0x2ee   :  { %2267 = vrcp.f32 %v320_v53 }
 0x2f4   :  { %v2266_v54 = vpop.eup %2265 }
 0x2f5   :  { %v327_v55 = vmul.f32 %v2266_v54, %v2262_v48 }
 0x2f7   :  { %329 = vst.msk [vmem:[#allocation4 + $0x20] sm:$0xff] %vm213_vm2, %v327_v55  ;;  %v331_v57 = vpack.c.bf16 %v327_v55, %v327_v55 }
 0x2f8   :  { %v2268_v58 = vpop.eup %2267 }
 0x2f9   :  { %v326_v59 = vmul.f32 %v2268_v58, %v2264_v50  ;;  %2060 = vmatmul.mubr.msk.bf16.vlgmr.msra.gmra.mrb[12].mxu0 %vm213_vm2, %v331_v57  ;;  %v1868_v58 = vld [vmem:[%s2735_s4 + $0x4] sm:$0xf] }
 0x2fa   :  { %2072 = vmatpush3.bf16.msra.mxu0 %v2243_v56  ;;  %2075 = vmatprep.mubr.msk.bf16.mxu0 %vm2342_vm0, %v2341_v1 }
 0x2fb   :  { %328 = vst.msk [vmem:[#allocation4] sm:$0xff] %vm213_vm2, %v326_v59  ;;  %v330_v62 = vpack.c.bf16 %v326_v59, %v326_v59  ;;  %2073 = vmatprep.subr.bf16.mxu0 %v2341_v1 }
 0x2fd   :  { %2054 = vmatmul.mubr.msk.bf16.vlgmr.msra.gmra.mrb[8].mxu1 %vm213_vm2, %v330_v62 }
 0x2fe   :  { %2074 = vmatpush3.bf16.msra.mxu0 %v2244_v60  ;;  %2064 = vmatpush3.bf16.msra.mxu1 %v2245_v61  ;;  %v43_v61 = vld [vmem:[%s2735_s4] sm:$0xf] }
 0x2ff   :  { %2065 = vmatprep.subr.bf16.mxu1 %v2341_v1  ;;  %2067 = vmatprep.mubr.msk.bf16.mxu1 %vm2342_vm0, %v2341_v1 }
 0x300   :  { %2087 = vmatprep.subr.bf16.mxu0 %v2341_v1 }
 0x301   :  { %2076 = vmatmul.mubr.msk.bf16.vlgmr.msra.gmra.mrb[16].mxu0 %vm56_vm1, %v2412_v7 }
 0x302   :  { %2066 = vmatpush3.bf16.msra.mxu1 %v2246_v63  ;;  %2089 = vmatprep.mubr.msk.bf16.mxu0 %vm2342_vm0, %v2341_v1 }
 0x303   :  { %2079 = vmatprep.subr.bf16.mxu1 %v2341_v1 }
 0x305   :  { %2068 = vmatmul.mubr.msk.bf16.vlgmr.msra.gmra.mrb[12].mxu1 %vm56_vm1, %v2412_v7 }
 0x306   :  { %2083 = vmatprep.mubr.msk.bf16.mxu1 %vm2342_vm0, %v2341_v1  ;;  %2080 = vmatpush3.bf16.msra.mxu1 %v2247_v0  ;;  %v824_v0 = vsel %vm335_vm3, %v1868_v58, 0 }
 0x307   :  { %2081 = vmatprep.subr.bf16.mxu1 %v2341_v1 }
 0x30a   :  { %2082 = vmatpush3.bf16.msra.mxu1 %v2248_v2 }
 0x30b   :  { %2093 = vmatprep.subr.bf16.mxu1 %v2341_v1 }
 0x30d   :  { %2084 = vmatmul.mubr.msk.bf16.vlgmr.msra.gmra.mrb[16].mxu1 %vm56_vm1, %v2412_v7 }
 0x30e   :  { %2095 = vmatprep.mubr.msk.bf16.mxu1 %vm2342_vm0, %v2341_v1 }
 0x3cc   :  { %v2499_v3 = vpop.f32.mrb[12].mxu0 }
 0x3cd   :  { %v2061_v4 = vpop.f32.mrb[13].mxu0 }
 0x3ce   :  { %v422_v5 = vpop.f32.mrb[14].mxu0  ;;  %v871_v4 = vsel %vm335_vm3, %v43_v61, 0 }
 0x3cf   :  { %v2062_v6 = vpop.f32.mrb[15].mxu0  ;;  %v2249_v5 = vld [vmem:[%s2733_s2 + $0x20] sm:$0xff]  }
 0x3d0   :  { %v2501_v8 = vpop.f32.mrb[8].mxu1  ;;  %v2250_v6 = vld [vmem:[%s2733_s2 + $0x28] sm:$0xff]  }
 0x3d1   :  { %v425_v9 = vpack.c.bf16 %v2499_v3, %v2501_v8  ;;  %v2055_v10 = vpop.f32.mrb[9].mxu1 }
 0x3d2   :  { %v376_v11 = vpop.f32.mrb[10].mxu1 }
 0x3d3   :  { %v2056_v12 = vpop.f32.mrb[11].mxu1  ;;  %v2251_v11 = vld [vmem:[%s2732_s1 + $0x20] sm:$0xff]  }
 0x3d4   :  { %v542_v13 = vpop.f32.mrb[16].mxu0 }
 0x3d5   :  { %v604_v14 = vpack.c.bf16 %v542_v13, %v542_v13  ;;  %v2077_v15 = vpop.f32.mrb[17].mxu0 }
 0x3d6   :  { %v545_v16 = vpop.f32.mrb[18].mxu0 }
 0x3d7   :  { %v612_v17 = vsel %vm213_vm2, %v604_v14, 0  ;;  %v605_v18 = vpack.c.bf16 %v545_v16, %v545_v16  ;;  %v2078_v19 = vpop.f32.mrb[19].mxu0 }
 0x3d8   :  { %2088 = vmatpush3.bf16.xpose.msra.mxu0 %v612_v17  ;;  %v489_v20 = vpop.f32.mrb[12].mxu1  ;;  %v2252_v17 = vld [vmem:[%s2732_s1 + $0x28] sm:$0xff]   ;;  %v2253_v19 = vld [vmem:[%s2734_s3 + $0x20] sm:$0xff]  }
 0x3d9   :  { %v658_v21 = vsel %vm213_vm2, %v605_v18, 0  ;;  %v2069_v22 = vpop.f32.mrb[13].mxu1  ;;  %2099 = vmatprep.subr.bf16.mxu0 %v2341_v1  ;;  %v602_v24 = vpack.c.bf16 %v489_v20, %v489_v20 }
 0x3da   :  { %2094 = vmatpush3.bf16.xpose.msra.mxu1 %v658_v21  ;;  %v492_v23 = vpop.f32.mrb[14].mxu1 }
 0x3db   :  { %v2070_v25 = vpop.f32.mrb[15].mxu1  ;;  %2105 = vmatprep.subr.bf16.mxu1 %v2341_v1  ;;  %v603_v26 = vpack.c.bf16 %v492_v23, %v492_v23  ;;  %v2254_v23 = vld [vmem:[%s2734_s3 + $0x28] sm:$0xff]  }
 0x3df   :  { %2090 = vmatmul.mubr.msk.bf16.vlgmr.msra.gmra.mrb[20].mxu0 %vm213_vm2, %v602_v24 }
 0x3e0   :  { %2101 = vmatprep.mubr.msk.bf16.mxu0 %vm2342_vm0, %v2341_v1  ;;  %v595_v27 = vpop.f32.mrb[16].mxu1 }
 0x3e1   :  { %2096 = vmatmul.mubr.msk.bf16.vlgmr.msra.gmra.mrb[20].mxu1 %vm213_vm2, %v603_v26  ;;  %v606_v28 = vpack.c.bf16 %v595_v27, %v595_v27  ;;  %v2085_v29 = vpop.f32.mrb[17].mxu1 }
 0x3e2   :  { %2107 = vmatprep.mubr.msk.bf16.mxu1 %vm2342_vm0, %v2341_v1  ;;  %v598_v30 = vpop.f32.mrb[18].mxu1 }
 0x3e3   :  { %v731_v31 = vsel %vm335_vm3, %v606_v28, 0  ;;  %v607_v32 = vpack.c.bf16 %v598_v30, %v598_v30  ;;  %v2086_v33 = vpop.f32.mrb[19].mxu1 }
 0x3e4   :  { %2100 = vmatpush3.bf16.msra.mxu0 %v731_v31 }
 0x3e5   :  { %v777_v34 = vsel %vm335_vm3, %v607_v32, 0  ;;  %2111 = vmatprep.subr.bf16.mxu0 %v2341_v1 }
 0x3e6   :  { %2106 = vmatpush3.bf16.msra.mxu1 %v777_v34 }
 0x3e7   :  { %2117 = vmatprep.subr.bf16.mxu1 %v2341_v1 }
 0x4b2   :  { %v648_v35 = vpop.f32.mrb[20].mxu0 }
 0x4b3   :  { %v2091_v36 = vpop.f32.mrb[21].mxu0  ;;  %v700_v37 = vsel %vm213_vm2, %v648_v35, -inf }
 0x4b4   :  { %v694_v38 = vpop.f32.mrb[20].mxu1  ;;  %701 = vmax.xlane.f32.xlu0 %v700_v37  ;;  %v651_v39 = vpop.f32.mrb[22].mxu0 }
 0x4b5   :  { %v2092_v40 = vpop.f32.mrb[23].mxu0  ;;  %v2097_v41 = vpop.f32.mrb[21].mxu1  ;;  %v703_v42 = vsel %vm213_vm2, %v694_v38, -inf }
 0x4b6   :  { %704 = vmax.xlane.f32.xlu1 %v703_v42  ;;  %v697_v43 = vpop.f32.mrb[22].mxu1 }
 0x4b7   :  { %v2098_v44 = vpop.f32.mrb[23].mxu1 }
 0x541   :  { %v702_v45 = vpop.xlane.xlu0 %701 }
 0x542   :  { %v706_v46 = vsub.f32 %v648_v35, %v702_v45 }
 0x543   :  { %v705_v47 = vpop.xlane.xlu1 %704 }
 0x544   :  { %v708_v48 = vmul.f32 1.442695, %v706_v46  ;;  %v707_v49 = vsub.f32 %v694_v38, %v705_v47 }
 0x546   :  { %2269 = vpow2.f32 %v708_v48  ;;  %v710_v50 = vmul.f32 1.442695, %v707_v49 }
 0x548   :  { %2271 = vpow2.f32 %v710_v50 }
 0x550   :  { %v2270_v51 = vpop.eup %2269 }
 0x551   :  { %v712_v52 = vsel %vm213_vm2, %v2270_v51, 0.0 }
 0x552   :  { %v2272_v53 = vpop.eup %2271  ;;  %713 = vadd.xlane.f32.xlu0 %v712_v52 }
 0x553   :  { %v715_v54 = vsel %vm213_vm2, %v2272_v53, 0.0 }
 0x554   :  { %716 = vadd.xlane.f32.xlu1 %v715_v54 }
 0x5df   :  { %v714_v55 = vpop.xlane.xlu0 %713 }
 0x5e0   :  { %2273 = vrcp.f32 %v714_v55 }
 0x5e1   :  { %v717_v56 = vpop.xlane.xlu1 %716 }
 0x5e2   :  { %2275 = vrcp.f32 %v717_v56 }
 0x5ea   :  { %v2274_v57 = vpop.eup %2273 }
 0x5eb   :  { %v720_v59 = vmul.f32 %v2274_v57, %v2270_v51 }
 0x5ec   :  { %v2276_v60 = vpop.eup %2275 }
 0x5ed   :  { %723 = vst.msk [vmem:[#allocation4 + $0x8] sm:$0xff] %vm213_vm2, %v720_v59  ;;  %v721_v62 = vmul.f32 %v2276_v60, %v2272_v53  ;;  %v725_v63 = vpack.c.bf16 %v720_v59, %v720_v59 }
 0x5ef   :  { %724 = vst.msk [vmem:[#allocation4 + $0x28] sm:$0xff] %vm213_vm2, %v721_v62  ;;  %2102 = vmatmul.mubr.msk.bf16.vlgmr.msra.gmra.mrb[24].mxu0 %vm213_vm2, %v725_v63  ;;  %v726_v2 = vpack.c.bf16 %v721_v62, %v721_v62 }
 0x5f0   :  { %2112 = vmatpush3.bf16.msra.mxu0 %v824_v0  ;;  %2113 = vmatprep.mubr.msk.bf16.mxu0 %vm2342_vm0, %v2341_v1 }
 0x5f1   :  { %2108 = vmatmul.mubr.msk.bf16.vlgmr.msra.gmra.mrb[24].mxu1 %vm213_vm2, %v726_v2  ;;  %2123 = vmatprep.subr.bf16.mxu0 %v2341_v1 }
 0x5f2   :  { %2118 = vmatpush3.bf16.msra.mxu1 %v871_v4  ;;  %2119 = vmatprep.mubr.msk.bf16.mxu1 %vm2342_vm0, %v2341_v1 }
 0x5f3   :  { %2131 = vmatprep.subr.bf16.mxu1 %v2341_v1 }
 0x5f9   :  { %2120 = vmatmul.mubr.msk.bf16.vlgmr.msra.gmra.mrb[28].mxu1 %vm213_vm2, %v425_v9 }
 0x5fa   :  { %2132 = vmatpush3.bf16.msra.mxu1 %v2249_v5  ;;  %2135 = vmatprep.mubr.msk.bf16.mxu1 %vm2342_vm0, %v2341_v1 }
 0x5fb   :  { %2133 = vmatprep.subr.bf16.mxu1 %v2341_v1 }
 0x5fe   :  { %2134 = vmatpush3.bf16.msra.mxu1 %v2250_v6 }
 0x5ff   :  { %2147 = vmatprep.subr.bf16.mxu1 %v2341_v1 }
 0x601   :  { %2136 = vmatmul.mubr.msk.bf16.vlgmr.msra.gmra.mrb[32].mxu1 %vm56_vm1, %v2412_v7 }
 0x602   :  { %2149 = vmatprep.mubr.msk.bf16.mxu1 %vm2342_vm0, %v2341_v1 }
 0x6c2   :  { %v767_v3 = vpop.f32.mrb[24].mxu0 }
 0x6c3   :  { %v2103_v8 = vpop.f32.mrb[25].mxu0 }
 0x6c4   :  { %v770_v9 = vpop.f32.mrb[26].mxu0  ;;  %v813_v10 = vpop.f32.mrb[24].mxu1 }
 0x6c5   :  { %v819_v12 = vpack.c.bf16 %v813_v10, %v767_v3  ;;  %v2104_v13 = vpop.f32.mrb[27].mxu0  ;;  %v2109_v14 = vpop.f32.mrb[25].mxu1 }
 0x6c6   :  { %v816_v15 = vpop.f32.mrb[26].mxu1  ;;  %v1896_v13 = vld [vmem:[%s2735_s4 + $0x8] sm:$0xf] }
 0x6c7   :  { %v2110_v16 = vpop.f32.mrb[27].mxu1  ;;  %2114 = vmatmul.mubr.msk.bf16.vlgmr.msra.gmra.mrb[28].mxu0 %vm213_vm2, %v819_v12 }
 0x6c8   :  { %2124 = vmatpush3.bf16.msra.mxu0 %v2251_v11  ;;  %2127 = vmatprep.mubr.msk.bf16.mxu0 %vm2342_vm0, %v2341_v1 }
 0x6c9   :  { %2125 = vmatprep.subr.bf16.mxu0 %v2341_v1 }
 0x6cc   :  { %v907_v18 = vpop.f32.mrb[28].mxu1  ;;  %2126 = vmatpush3.bf16.msra.mxu0 %v2252_v17 }
 0x6cd   :  { %v2121_v20 = vpop.f32.mrb[29].mxu1  ;;  %2139 = vmatprep.subr.bf16.mxu0 %v2341_v1 }
 0x6ce   :  { %v910_v21 = vpop.f32.mrb[30].mxu1  ;;  %v2257_v20 = vld [vmem:[%s2732_s1 + $0x30] sm:$0xff]  }
 0x6cf   :  { %v2122_v22 = vpop.f32.mrb[31].mxu1  ;;  %2128 = vmatmul.mubr.msk.bf16.vlgmr.msra.gmra.mrb[32].mxu0 %vm56_vm1, %v2412_v7 }
 0x6d0   :  { %2140 = vmatpush3.bf16.msra.mxu0 %v2253_v19  ;;  %2143 = vmatprep.mubr.msk.bf16.mxu0 %vm2342_vm0, %v2341_v1 }
 0x6d1   :  { %2141 = vmatprep.subr.bf16.mxu0 %v2341_v1 }
 0x6d4   :  { %2142 = vmatpush3.bf16.msra.mxu0 %v2254_v23  ;;  %v1030_v24 = vpop.f32.mrb[32].mxu1 }
 0x6d5   :  { %v1092_v25 = vpack.c.bf16 %v1030_v24, %v1030_v24  ;;  %v2137_v26 = vpop.f32.mrb[33].mxu1  ;;  %2153 = vmatprep.subr.bf16.mxu0 %v2341_v1 }
 0x6d6   :  { %v1033_v27 = vpop.f32.mrb[34].mxu1  ;;  %v2255_v26 = vld [vmem:[%s2733_s2 + $0x30] sm:$0xff]  }
 0x6d7   :  { %v1100_v28 = vsel %vm213_vm2, %v1092_v25, 0  ;;  %v1093_v29 = vpack.c.bf16 %v1033_v27, %v1033_v27  ;;  %v2138_v30 = vpop.f32.mrb[35].mxu1  ;;  %2144 = vmatmul.mubr.msk.bf16.vlgmr.msra.gmra.mrb[36].mxu0 %vm56_vm1, %v2412_v7 }
 0x6d8   :  { %2148 = vmatpush3.bf16.xpose.msra.mxu1 %v1100_v28  ;;  %2155 = vmatprep.mubr.msk.bf16.mxu0 %vm2342_vm0, %v2341_v1 }
 0x6d9   :  { %2159 = vmatprep.subr.bf16.mxu1 %v2341_v1  ;;  %v1146_v31 = vsel %vm213_vm2, %v1093_v29, 0 }
 0x6dd   :  { %2154 = vmatpush3.bf16.xpose.msra.mxu0 %v1146_v31 }
 0x6de   :  { %2165 = vmatprep.subr.bf16.mxu0 %v2341_v1 }
 0x79a   :  { %v860_v32 = vpop.f32.mrb[28].mxu0 }
 0x79b   :  { %v2590_v33 = vadd.f32 %v907_v18, %v860_v32  ;;  %v2115_v34 = vpop.f32.mrb[29].mxu0  ;;  %v1312_v18 = vsel %vm335_vm3, %v1896_v13, 0  ;;  %v2256_v32 = vld [vmem:[%s2733_s2 + $0x38] sm:$0xff]  }
 0x79c   :  { %v863_v35 = vpop.f32.mrb[30].mxu0  ;;  %v2259_v34 = vld [vmem:[%s2734_s3 + $0x30] sm:$0xff]  }
 0x79d   :  { %v2592_v36 = vadd.f32 %v910_v21, %v863_v35  ;;  %v2116_v37 = vpop.f32.mrb[31].mxu0  ;;  %v2258_v21 = vld [vmem:[%s2732_s1 + $0x38] sm:$0xff]  }
 0x79e   :  { %v2260_v35 = vld [vmem:[%s2734_s3 + $0x38] sm:$0xff]  }
 0x7a2   :  { %v977_v38 = vpop.f32.mrb[32].mxu0 }
 0x7a3   :  { %v1090_v39 = vpack.c.bf16 %v977_v38, %v977_v38  ;;  %v2129_v40 = vpop.f32.mrb[33].mxu0 }
 0x7a4   :  { %v980_v41 = vpop.f32.mrb[34].mxu0 }
 0x7a5   :  { %v1091_v42 = vpack.c.bf16 %v980_v41, %v980_v41  ;;  %v2130_v43 = vpop.f32.mrb[35].mxu0  ;;  %2150 = vmatmul.mubr.msk.bf16.vlgmr.msra.gmra.mrb[36].mxu1 %vm213_vm2, %v1090_v39 }
 0x7a6   :  { %2161 = vmatprep.mubr.msk.bf16.mxu1 %vm2342_vm0, %v2341_v1 }
 0x7a7   :  { %2156 = vmatmul.mubr.msk.bf16.vlgmr.msra.gmra.mrb[40].mxu0 %vm213_vm2, %v1091_v42 }
 0x7a8   :  { %2167 = vmatprep.mubr.msk.bf16.mxu0 %vm2342_vm0, %v2341_v1 }
 0x7aa   :  { %v1083_v44 = vpop.f32.mrb[36].mxu0 }
 0x7ab   :  { %v1094_v45 = vpack.c.bf16 %v1083_v44, %v1083_v44  ;;  %v2145_v46 = vpop.f32.mrb[37].mxu0 }
 0x7ac   :  { %v1086_v47 = vpop.f32.mrb[38].mxu0 }
 0x7ad   :  { %v1219_v48 = vsel %vm335_vm3, %v1094_v45, 0  ;;  %v1095_v49 = vpack.c.bf16 %v1086_v47, %v1086_v47  ;;  %v2146_v50 = vpop.f32.mrb[39].mxu0 }
 0x7ae   :  { %2160 = vmatpush3.bf16.msra.mxu1 %v1219_v48 }
 0x7af   :  { %v1265_v51 = vsel %vm335_vm3, %v1095_v49, 0  ;;  %2171 = vmatprep.subr.bf16.mxu1 %v2341_v1 }
 0x7b0   :  { %2166 = vmatpush3.bf16.msra.mxu0 %v1265_v51 }
 0x7b1   :  { %2177 = vmatprep.subr.bf16.mxu0 %v2341_v1 }
 0x878   :  { %v1136_v52 = vpop.f32.mrb[36].mxu1 }
 0x879   :  { %v2151_v53 = vpop.f32.mrb[37].mxu1  ;;  %v1188_v54 = vsel %vm213_vm2, %v1136_v52, -inf }
 0x87a   :  { %1189 = vmax.xlane.f32.xlu0 %v1188_v54  ;;  %v1139_v55 = vpop.f32.mrb[38].mxu1  ;;  %v1182_v56 = vpop.f32.mrb[40].mxu0 }
 0x87b   :  { %v2152_v57 = vpop.f32.mrb[39].mxu1  ;;  %v2157_v58 = vpop.f32.mrb[41].mxu0  ;;  %v1191_v59 = vsel %vm213_vm2, %v1182_v56, -inf }
 0x87c   :  { %1192 = vmax.xlane.f32.xlu1 %v1191_v59  ;;  %v1185_v60 = vpop.f32.mrb[42].mxu0 }
 0x87d   :  { %v2158_v61 = vpop.f32.mrb[43].mxu0 }
 0x907   :  { %v1190_v62 = vpop.xlane.xlu0 %1189 }
 0x908   :  { %v1194_v63 = vsub.f32 %v1136_v52, %v1190_v62 }
 0x909   :  { %v1193_v0 = vpop.xlane.xlu1 %1192 }
 0x90a   :  { %v1196_v2 = vmul.f32 1.442695, %v1194_v63  ;;  %v1195_v4 = vsub.f32 %v1182_v56, %v1193_v0 }
 0x90c   :  { %2277 = vpow2.f32 %v1196_v2  ;;  %v1198_v5 = vmul.f32 1.442695, %v1195_v4 }
 0x90e   :  { %2279 = vpow2.f32 %v1198_v5 }
 0x916   :  { %v2278_v6 = vpop.eup %2277 }
 0x917   :  { %v1200_v3 = vsel %vm213_vm2, %v2278_v6, 0.0 }
 0x918   :  { %v2280_v8 = vpop.eup %2279  ;;  %1201 = vadd.xlane.f32.xlu0 %v1200_v3 }
 0x919   :  { %v1203_v9 = vsel %vm213_vm2, %v2280_v8, 0.0 }
 0x91a   :  { %1204 = vadd.xlane.f32.xlu1 %v1203_v9 }
 0x9a5   :  { %v1202_v10 = vpop.xlane.xlu0 %1201 }
 0x9a6   :  { %2281 = vrcp.f32 %v1202_v10 }
 0x9a7   :  { %v1205_v11 = vpop.xlane.xlu1 %1204 }
 0x9a8   :  { %2283 = vrcp.f32 %v1205_v11 }
 0x9b0   :  { %v2282_v12 = vpop.eup %2281 }
 0x9b1   :  { %v1208_v14 = vmul.f32 %v2282_v12, %v2278_v6 }
 0x9b2   :  { %v2284_v15 = vpop.eup %2283 }
 0x9b3   :  { %1211 = vst.msk [vmem:[#allocation4 + $0x10] sm:$0xff] %vm213_vm2, %v1208_v14  ;;  %v1209_v16 = vmul.f32 %v2284_v15, %v2280_v8  ;;  %v1213_v17 = vpack.c.bf16 %v1208_v14, %v1208_v14 }
 0x9b5   :  { %1212 = vst.msk [vmem:[#allocation4 + $0x30] sm:$0xff] %vm213_vm2, %v1209_v16  ;;  %2162 = vmatmul.mubr.msk.bf16.vlgmr.msra.gmra.mrb[40].mxu1 %vm213_vm2, %v1213_v17  ;;  %v1214_v19 = vpack.c.bf16 %v1209_v16, %v1209_v16 }
 0x9b6   :  { %2172 = vmatpush3.bf16.msra.mxu1 %v1312_v18  ;;  %2173 = vmatprep.mubr.msk.bf16.mxu1 %vm2342_vm0, %v2341_v1 }
 0x9b7   :  { %2168 = vmatmul.mubr.msk.bf16.vlgmr.msra.gmra.mrb[44].mxu0 %vm213_vm2, %v1214_v19  ;;  %2185 = vmatprep.subr.bf16.mxu1 %v2341_v1 }
 0x9b8   :  { %2181 = vmatprep.mubr.msk.bf16.mxu0 %vm2342_vm0, %v2341_v1  ;;  %2178 = vmatpush3.bf16.msra.mxu0 %v2257_v20 }
 0x9b9   :  { %2179 = vmatprep.subr.bf16.mxu0 %v2341_v1 }
 0x9bc   :  { %2180 = vmatpush3.bf16.msra.mxu0 %v2258_v21 }
 0x9bd   :  { %2193 = vmatprep.subr.bf16.mxu0 %v2341_v1 }
 0x9bf   :  { %2182 = vmatmul.mubr.msk.bf16.vlgmr.msra.gmra.mrb[48].mxu0 %vm56_vm1, %v2412_v7 }
 0x9c0   :  { %2197 = vmatprep.mubr.msk.bf16.mxu0 %vm2342_vm0, %v2341_v1  ;;  %2194 = vmatpush3.bf16.msra.mxu0 %v2259_v34 }
 0x9c1   :  { %2195 = vmatprep.subr.bf16.mxu0 %v2341_v1 }
 0x9c4   :  { %2196 = vmatpush3.bf16.msra.mxu0 %v2260_v35 }
 0x9c5   :  { %2207 = vmatprep.subr.bf16.mxu0 %v2341_v1 }
 0x9c7   :  { %2198 = vmatmul.mubr.msk.bf16.vlgmr.msra.gmra.mrb[52].mxu0 %vm56_vm1, %v2412_v7 }
 0x9c8   :  { %2209 = vmatprep.mubr.msk.bf16.mxu0 %vm2342_vm0, %v2341_v1 }
 0xa88   :  { %v1255_v22 = vpop.f32.mrb[40].mxu1 }
 0xa89   :  { %v2163_v23 = vpop.f32.mrb[41].mxu1 }
 0xa8a   :  { %v1258_v24 = vpop.f32.mrb[42].mxu1  ;;  %v1301_v25 = vpop.f32.mrb[44].mxu0  ;;  %v1923_v23 = vld [vmem:[%s2735_s4 + $0xc] sm:$0xf]  ;;  %s2343_s4 = smov [#allocation4]  }
 0xa8b   :  { %v1307_v27 = vpack.c.bf16 %v1301_v25, %v1255_v22  ;;  %v2164_v28 = vpop.f32.mrb[43].mxu1  ;;  %v2169_v29 = vpop.f32.mrb[45].mxu0  ;;  %s1828_s10 = sshll.u32 %s2343_s4, 4  ;;  %s1829_s10 = int_to_ptr.vmem [resolvable:$true] %s1828_s10 }
 0xa8c   :  { %v1304_v30 = vpop.f32.mrb[46].mxu0  ;;  %v1755_v28 = vsel %vm335_vm3, %v1923_v23, 0  ;;  %s2293_s11 = scalar_lea.vmem %s1829_s10, 1024  ;;  %p2298_p1 = scmp.lt.s32.totalorder %s1829_s10, %s1829_s10 }
 0xa8d   :  { %v2170_v31 = vpop.f32.mrb[47].mxu0  ;;  %2174 = vmatmul.mubr.msk.bf16.vlgmr.msra.gmra.mrb[44].mxu1 %vm213_vm2, %v1307_v27  ;;  %p2294_p0 = scmp.ne.s32.totalorder %s1829_s10, %s2293_s11  ;;  %p2299_p2 = scmp.lt.s32.totalorder %s2293_s11, %s2293_s11 }
 0xa8e   :  { %2186 = vmatpush3.bf16.msra.mxu1 %v2255_v26  ;;  %2189 = vmatprep.mubr.msk.bf16.mxu1 %vm2342_vm0, %v2341_v1 }
 0xa8f   :  { %2187 = vmatprep.subr.bf16.mxu1 %v2341_v1  ;;  %p2300_p3 = por %p2299_p2, %p2298_p1 }
 0xa91   :  { %p2301_p4 = pnand %p2300_p3, %p2294_p0 }
 0xa92   :  { %2188 = vmatpush3.bf16.msra.mxu1 %v2256_v32  ;;  %v1420_v37 = vpop.f32.mrb[48].mxu0 }
 0xa93   :  { %2201 = vmatprep.subr.bf16.mxu1 %v2341_v1  ;;  %v2183_v38 = vpop.f32.mrb[49].mxu0 }
 0xa94   :  { %v1423_v39 = vpop.f32.mrb[50].mxu0 }
 0xa95   :  { %2190 = vmatmul.mubr.msk.bf16.vlgmr.msra.gmra.mrb[48].mxu1 %vm56_vm1, %v2412_v7  ;;  %v2184_v40 = vpop.f32.mrb[51].mxu0 }
 0xa96   :  { %2203 = vmatprep.mubr.msk.bf16.mxu1 %vm2342_vm0, %v2341_v1 }
 0xa9a   :  { %v1526_v54 = vpop.f32.mrb[52].mxu0 }
 0xa9b   :  { %v1537_v55 = vpack.c.bf16 %v1526_v54, %v1526_v54  ;;  %v2199_v56 = vpop.f32.mrb[53].mxu0 }
 0xa9c   :  { %v1529_v57 = vpop.f32.mrb[54].mxu0 }
 0xa9d   :  { %v1662_v58 = vsel %vm335_vm3, %v1537_v55, 0  ;;  %v1538_v59 = vpack.c.bf16 %v1529_v57, %v1529_v57  ;;  %v2200_v60 = vpop.f32.mrb[55].mxu0 }
 0xa9f   :  { %v1708_v61 = vsel %vm335_vm3, %v1538_v59, 0 }
 0xb60   :  { %v1348_v41 = vpop.f32.mrb[44].mxu1 }
 0xb61   :  { %v2661_v42 = vadd.f32 %v1348_v41, %v2590_v33  ;;  %v2175_v43 = vpop.f32.mrb[45].mxu1  ;;  %v1533_v33 = vpack.c.bf16 %v1420_v37, %v1420_v37 }
 0xb62   :  { %v1351_v44 = vpop.f32.mrb[46].mxu1 }
 0xb63   :  { %v2664_v45 = vadd.f32 %v1351_v44, %v2592_v36  ;;  %v2176_v46 = vpop.f32.mrb[47].mxu1  ;;  %v1534_v36 = vpack.c.bf16 %v1423_v39, %v1423_v39 }
 0xb68   :  { %v1473_v47 = vpop.f32.mrb[48].mxu1 }
 0xb69   :  { %v1535_v48 = vpack.c.bf16 %v1473_v47, %v1473_v47  ;;  %v2191_v7 = vpop.f32.mrb[49].mxu1 }
 0xb6a   :  { %v1476_v49 = vpop.f32.mrb[50].mxu1 }
 0xb6b   :  { %v1543_v50 = vsel %vm213_vm2, %v1535_v48, 0  ;;  %v1536_v51 = vpack.c.bf16 %v1476_v49, %v1476_v49  ;;  %v2192_v52 = vpop.f32.mrb[51].mxu1 }
 0xb6c   :  { %2202 = vmatpush3.bf16.xpose.msra.mxu1 %v1543_v50 }
 0xb6d   :  { %v1589_v53 = vsel %vm213_vm2, %v1536_v51, 0  ;;  %2213 = vmatprep.subr.bf16.mxu1 %v2341_v1 }
 0xb6e   :  { %2208 = vmatpush3.bf16.xpose.msra.mxu0 %v1589_v53 }
 0xb6f   :  { %2219 = vmatprep.subr.bf16.mxu0 %v2341_v1 }
 0xb73   :  { %2204 = vmatmul.mubr.msk.bf16.vlgmr.msra.gmra.mrb[52].mxu1 %vm213_vm2, %v1533_v33 }
 0xb74   :  { %2215 = vmatprep.mubr.msk.bf16.mxu1 %vm2342_vm0, %v2341_v1  ;;  %2214 = vmatpush3.bf16.msra.mxu1 %v1662_v58 }
 0xb75   :  { %2210 = vmatmul.mubr.msk.bf16.vlgmr.msra.gmra.mrb[56].mxu0 %vm213_vm2, %v1534_v36  ;;  %2225 = vmatprep.subr.bf16.mxu1 %v2341_v1 }
 0xb76   :  { %2221 = vmatprep.mubr.msk.bf16.mxu0 %vm2342_vm0, %v2341_v1  ;;  %2220 = vmatpush3.bf16.msra.mxu0 %v1708_v61 }
 0xc46   :  { %v1579_v62 = vpop.f32.mrb[52].mxu1 }
 0xc47   :  { %v2205_v63 = vpop.f32.mrb[53].mxu1  ;;  %v1631_v0 = vsel %vm213_vm2, %v1579_v62, -inf }
 0xc48   :  { %1632 = vmax.xlane.f32.xlu0 %v1631_v0  ;;  %v1582_v2 = vpop.f32.mrb[54].mxu1  ;;  %v1625_v4 = vpop.f32.mrb[56].mxu0 }
 0xc49   :  { %v2206_v5 = vpop.f32.mrb[55].mxu1  ;;  %v2211_v6 = vpop.f32.mrb[57].mxu0  ;;  %v1634_v3 = vsel %vm213_vm2, %v1625_v4, -inf }
 0xc4a   :  { %1635 = vmax.xlane.f32.xlu1 %v1634_v3  ;;  %v1628_v8 = vpop.f32.mrb[58].mxu0 }
 0xc4b   :  { %v2212_v9 = vpop.f32.mrb[59].mxu0 }
 0xcd5   :  { %v1633_v10 = vpop.xlane.xlu0 %1632 }
 0xcd6   :  { %v1637_v11 = vsub.f32 %v1579_v62, %v1633_v10 }
 0xcd7   :  { %v1636_v12 = vpop.xlane.xlu1 %1635 }
 0xcd8   :  { %v1639_v13 = vmul.f32 1.442695, %v1637_v11  ;;  %v1638_v14 = vsub.f32 %v1625_v4, %v1636_v12 }
 0xcda   :  { %2285 = vpow2.f32 %v1639_v13  ;;  %v1641_v15 = vmul.f32 1.442695, %v1638_v14 }
 0xcdc   :  { %2287 = vpow2.f32 %v1641_v15 }
 0xce4   :  { %v2286_v16 = vpop.eup %2285 }
 0xce5   :  { %v1643_v17 = vsel %vm213_vm2, %v2286_v16, 0.0 }
 0xce6   :  { %v2288_v18 = vpop.eup %2287  ;;  %1644 = vadd.xlane.f32.xlu0 %v1643_v17 }
 0xce7   :  { %v1646_v19 = vsel %vm213_vm2, %v2288_v18, 0.0 }
 0xce8   :  { %1647 = vadd.xlane.f32.xlu1 %v1646_v19 }
 0xd73   :  { %v1645_v20 = vpop.xlane.xlu0 %1644 }
 0xd74   :  { %2289 = vrcp.f32 %v1645_v20 }
 0xd75   :  { %v1648_v21 = vpop.xlane.xlu1 %1647 }
 0xd76   :  { %2291 = vrcp.f32 %v1648_v21 }
 0xd7e   :  { %v2290_v22 = vpop.eup %2289 }
 0xd7f   :  { %v1651_v24 = vmul.f32 %v2290_v22, %v2286_v16 }
 0xd80   :  { %v2292_v25 = vpop.eup %2291 }
 0xd81   :  { %1654 = vst.msk [vmem:[#allocation4 + $0x18] sm:$0xff] %vm213_vm2, %v1651_v24  ;;  %v1652_v26 = vmul.f32 %v2292_v25, %v2288_v18  ;;  %v1656_v27 = vpack.c.bf16 %v1651_v24, %v1651_v24 }
 0xd83   :  { %1655 = vst.msk [vmem:[#allocation4 + $0x38] sm:$0xff] %vm213_vm2, %v1652_v26  ;;  %2216 = vmatmul.mubr.msk.bf16.vlgmr.msra.gmra.mrb[56].mxu1 %vm213_vm2, %v1656_v27  ;;  %v1657_v29 = vpack.c.bf16 %v1652_v26, %v1652_v26 }
 0xd84   :  { %2226 = vmatpush3.bf16.msra.mxu1 %v1755_v28  ;;  %2227 = vmatprep.mubr.msk.bf16.mxu1 %vm2342_vm0, %v2341_v1 }
 0xd85   :  { %2222 = vmatmul.mubr.msk.bf16.vlgmr.msra.gmra.mrb[60].mxu0 %vm213_vm2, %v1657_v29 }
 0xe56   :  { %v1698_v30 = vpop.f32.mrb[56].mxu1 }
 0xe57   :  { %v2217_v31 = vpop.f32.mrb[57].mxu1 }
 0xe58   :  { %v1701_v32 = vpop.f32.mrb[58].mxu1  ;;  %v1744_v34 = vpop.f32.mrb[60].mxu0 }
 0xe59   :  { %v1750_v35 = vpack.c.bf16 %v1744_v34, %v1698_v30  ;;  %v2218_v37 = vpop.f32.mrb[59].mxu1  ;;  %v2223_v38 = vpop.f32.mrb[61].mxu0 }
 0xe5a   :  { %v1747_v39 = vpop.f32.mrb[62].mxu0 }
 0xe5b   :  { %v2224_v40 = vpop.f32.mrb[63].mxu0  ;;  %2228 = vmatmul.mubr.msk.bf16.vlgmr.msra.gmra.mrb[60].mxu1 %vm213_vm2, %v1750_v35 }
 0xe5c   :  { %2304 = shalt.err (!%p2301_p4)
}
 0xe5d   :  { %s2305_s14 = scalar_lea.hbm %s2738_s7, 1024 }
 0xe5e   :  { %p2306_p5 = scmp.ne.s32.totalorder %s2738_s7, %s2305_s14  ;;  %p2309_p6 = scmp.lt.u32.totalorder %s2305_s14, %s2738_s7 }
 0xe60   :  { %p2311_p7 = pnand %p2309_p6, %p2306_p5 }
 0xe62   :  { %2314 = shalt.err (!%p2311_p7)
}
 0xe63   :  { %s2344_s18 = smov 128   ;;  %s2345_s19 = smov 8   ;;  %v1938_v41 = vld [vmem:[%s2736_s5] ss:$0 sm:$0xff] }
 0xe64   :  { %1834 = dma.vmem_to_hbm [thread:$0]  %s1829_s10, 1024, %s2738_s7, [#allocation5], %s2344_s18, %s2344_s18, %s2345_s19  }
 0xe65   :  { %s2346_s24 = smov [#allocation2]  }
 0xe66   :  { %s1816_s25 = sshll.u32 %s2346_s24, 4  ;;  %s1817_s25 = int_to_ptr.vmem [resolvable:$true] %s1816_s25 }
 0xe67   :  { %s2315_s7 = scalar_lea.vmem %s1817_s25, 256  ;;  %p2320_p9 = scmp.lt.s32.totalorder %s1817_s25, %s1817_s25 }
 0xe68   :  { %p2316_p8 = scmp.ne.s32.totalorder %s1817_s25, %s2315_s7  ;;  %p2321_p10 = scmp.lt.s32.totalorder %s2315_s7, %s2315_s7 }
 0xe6a   :  { %p2322_p11 = por %p2321_p10, %p2320_p9 }
 0xe6c   :  { %p2323_p12 = pnand %p2322_p11, %p2316_p8 }
 0xf2e   :  { %v1791_v1 = vpop.f32.mrb[60].mxu1 }
 0xf2f   :  { %v1798_v43 = vadd.f32 %v1791_v1, %v2661_v42  ;;  %v2229_v44 = vpop.f32.mrb[61].mxu1 }
 0xf30   :  { %v1794_v46 = vpop.f32.mrb[62].mxu1 }
 0xf31   :  { %v1807_v47 = vadd.f32 %v1938_v41, %v1798_v43  ;;  %v1799_v48 = vadd.f32 %v1794_v46, %v2664_v45  ;;  %v2230_v7 = vpop.f32.mrb[63].mxu1 }
 0xf33   :  { %1809 = vst.msk [vmem:[#allocation2] sm:$0xff] %vm56_vm1, %v1807_v47  ;;  %v1808_v49 = vadd.f32 %v1938_v41, %v1799_v48 }
 0xf35   :  { %1810 = vst.msk [vmem:[#allocation2 + $0x8] sm:$0xff] %vm56_vm1, %v1808_v49 }
 0xf36   :  { %2326 = shalt.err (!%p2323_p12)
}
 0xf37   :  { %s2327_s27 = scalar_lea.hbm %s2737_s6, 256 }
 0xf38   :  { %p2328_p13 = scmp.ne.s32.totalorder %s2737_s6, %s2327_s27  ;;  %p2331_p0 = scmp.lt.u32.totalorder %s2327_s27, %s2737_s6 }
 0xf3a   :  { %p2333_p1 = pnand %p2331_p0, %p2328_p13 }
 0xf3c   :  { %2336 = shalt.err (!%p2333_p1)
}
 0xf3d   :  { %1822 = dma.vmem_to_hbm [thread:$0]  %s1817_s25, 256, %s2737_s6, [#allocation3], %s2344_s18, %s2344_s18, %s2345_s19  }
 0xf3e   :  { %2337 = dma.done.wait [#allocation3], 256  }
 0xf3f   :  { %2338 = vsyncadd [#allocation3], 4294967040 }
 0xf40   :  { %2339 = dma.done.wait [#allocation5], 1024  }
 0xf41   :  { %2340 = vsyncadd [#allocation5], 4294966272 }
 0xf42   :  { %1841 = vsyncpa [#allocation3], 1 }
 0xf43   :  { %1842 = vsyncpa [#allocation5], 1 }

</bundles_post_ra>
